<compile_context>
chip_gen: v5e
topology: v5e:2x2
jax: 0.10.0
libtpu: 0.0.40
codegen_flags: <defaults>
</compile_context>

<pallas_src>
import functools

import jax
import jax.numpy as jnp
from jax.experimental import pallas as pl
from jax.experimental.pallas import tpu as pltpu


# --------------------------------------------------------------------------- helpers

def extract_patches(img, patch_size):
    """JAX equivalent of the PyTorch `Patches` module (layout only, no compute)."""
    B, C, H, W = img.shape
    ps = patch_size
    nh, nw = H // ps, W // ps
    p = img.reshape(B, C, nh, ps, nw, ps)
    p = p.transpose(0, 2, 4, 1, 3, 5)      # (B, nh, nw, C, ph, pw) — torch unfold order
    return p.reshape(B, nh * nw, C * ps * ps)


def reference_patch_embed(img, w, b, pos_emb, patch_size, compute_dtype=None):
    """Pure-JAX reference (with optional operand rounding matching the kernel)."""
    patches = extract_patches(img, patch_size).astype(jnp.float32)
    w32 = w.astype(jnp.float32)
    if compute_dtype is not None:
        patches = patches.astype(compute_dtype).astype(jnp.float32)
        w32 = w32.astype(compute_dtype).astype(jnp.float32)
    proj = jnp.einsum("bnp,pd->bnd", patches, w32)
    return proj + b.astype(jnp.float32)[None, None, :] + pos_emb.astype(jnp.float32)[None, :, :]


def _pick_rows_per_group(nh, nw, ps, target_rows):
    """Largest divisor r of nh with r*nw matmul rows <= target and aligned blocks.

    Alignment rule: the image block's second-minor dim (r*ps) and the output
    block's second-minor dim (r*nw) must be multiples of 8 unless the block
    spans the full dimension (r == nh).
    """
    for r in range(nh, 0, -1):
        if nh % r:
            continue
        aligned = (r == nh) or ((r * ps) % 8 == 0 and (r * nw) % 8 == 0)
        if aligned and r * nw <= target_rows:
            return r
    return nh


def _pick_row_tile(n, target_rows):
    """Row tile over the flattened patch axis for the fallback path."""
    if n <= target_rows:
        return n
    for t in range(target_rows, 0, -1):
        if n % t == 0 and t % 8 == 0:
            return t
    return n


# --------------------------------------------------------------------------- kernels

def _fused_patch_embed_kernel(img_ref, w_ref, pos_ref, out_ref, *, patch_size):
    # img_ref: (C, R*ps, W)  image slab for one batch element / row group (raw dtype)
    # w_ref:   (P, D)        projection weight (compute dtype), resident across grid
    # pos_ref: (Ng, D)       position embedding + folded bias (f32), Ng = R*nw
    # out_ref: (Ng, D)
    ps = patch_size
    C, Rps, W = img_ref.shape
    R, nw = Rps // ps, W // ps
    P = C * ps * ps

    # VMEM-local patchify (torch unfold order: rows (i, j), cols (c, ph, pw)).
    # The relayout stays in f32 (best-supported); it never touches HBM.
    x = img_ref[...]
    x = x.reshape(C, R, ps, nw, ps)                # (c, i, ph, j, pw)
    x = jnp.transpose(x, (1, 3, 0, 2, 4))          # (i, j, c, ph, pw)
    patches = x.reshape(R * nw, P)
    patches = patches.astype(w_ref.dtype)          # MXU operand cast, VMEM-only

    acc = jnp.dot(patches, w_ref[...], preferred_element_type=jnp.float32)
    out_ref[...] = (acc + pos_ref[...]).astype(out_ref.dtype)


def _matmul_patch_embed_kernel(patch_ref, w_ref, pos_ref, out_ref):
    # Fallback kernel: patch_ref is a (tm, P) row tile of pre-extracted patches.
    acc = jnp.dot(patch_ref[...], w_ref[...], preferred_element_type=jnp.float32)
    out_ref[...] = (acc + pos_ref[...]).astype(out_ref.dtype)


# --------------------------------------------------------------------------- wrappers

@functools.partial(
    jax.jit,
    static_argnames=("patch_size", "compute_dtype", "target_rows", "single_buffer_resident"),
)
def patch_embedding_fused(img, w, b, pos_emb, *, patch_size,
                          compute_dtype=jnp.bfloat16, target_rows=512,
                          single_buffer_resident=False):
    """Fused Patches + PatchEmbedding: (B, C, H, W) -> (B, N, D).

    The image is streamed from HBM exactly once; the patch matrix is built in
    VMEM and immediately consumed by the MXU.
    """
    B, C, H, Wimg = img.shape
    ps = patch_size
    assert H % ps == 0 and Wimg % ps == 0
    nh, nw = H // ps, Wimg // ps
    N, P = nh * nw, C * ps * ps
    Pw, D = w.shape
    assert Pw == P and pos_emb.shape == (N, D) and b.shape == (D,)
    out_dtype = img.dtype

    # Fold the linear bias into the position embedding (one fewer input stream).
    pos_b = pos_emb.astype(jnp.float32) + b.astype(jnp.float32)[None, :]
    # Weight cast only (tiny, resident); the activation cast happens in-kernel.
    w_c = w if compute_dtype is None else w.astype(compute_dtype)

    R = _pick_rows_per_group(nh, nw, ps, target_rows)
    Ng = R * nw                       # matmul rows per grid step
    n_rg = nh // R
    # Rows OUTER, batch INNER: pos tile index (rg, 0) is constant across the
    # inner axis -> it is DMA'd n_rg times total, not n_rg*B times.
    grid = (n_rg, B)

    if single_buffer_resident:
        # v7x (64 MiB VMEM): the weight block index is constant, so one buffer
        # is enough; halves its footprint at ViT-H/G sizes.
        w_spec = pl.BlockSpec((P, D), lambda rg, bi: (0, 0),
                              pipeline_mode=pl.Buffered(buffer_count=1))
    else:
        w_spec = pl.BlockSpec((P, D), lambda rg, bi: (0, 0))

    cost = pl.CostEstimate(                       # true (unpadded) dims
        flops=2 * B * N * P * D,
        transcendentals=0,
        bytes_accessed=int(img.size * jnp.dtype(img.dtype).itemsize
                           + w_c.size * jnp.dtype(w_c.dtype).itemsize
                           + pos_b.size * 4
                           + B * N * D * jnp.dtype(out_dtype).itemsize),
    )

    kernel = functools.partial(_fused_patch_embed_kernel, patch_size=ps)

    return pl.pallas_call(
        kernel,
        out_shape=jax.ShapeDtypeStruct((B, N, D), out_dtype),
        grid_spec=pltpu.PrefetchScalarGridSpec(
            num_scalar_prefetch=0,
            grid=grid,
            in_specs=[
                # Image slab: (C, R*ps, W) rows of patches for one batch element.
                pl.BlockSpec((None, C, R * ps, Wimg), lambda rg, bi: (bi, 0, rg, 0)),
                # Projection weight: constant block index -> stays resident.
                w_spec,
                # Matching row group of (pos_emb + bias): reused across batch.
                pl.BlockSpec((Ng, D), lambda rg, bi: (rg, 0)),
            ],
            out_specs=pl.BlockSpec((None, Ng, D), lambda rg, bi: (bi, rg, 0)),
        ),
        compiler_params=pltpu.CompilerParams(
            # Both axes independent -> megacore sharding on v7x (>=2 steps via
            # batch and/or row groups).  NOTE: raise vmem_limit_bytes only if a
            # sweep at ViT-H/G shapes shows the scoped default binding.
            dimension_semantics=("parallel", "parallel"),
        ),
        cost_estimate=cost,
    )(img, w_c, pos_b)


@functools.partial(jax.jit, static_argnames=("patch_size", "compute_dtype", "target_rows"))
def patch_embedding_unfused(img, w, b, pos_emb, *, patch_size,
                            compute_dtype=jnp.bfloat16, target_rows=512):
    """Fallback: host-side patchify (cast fused into the same XLA pass) + matmul kernel."""
    B, C, H, Wimg = img.shape
    ps = patch_size
    nh, nw = H // ps, Wimg // ps
    N, P = nh * nw, C * ps * ps
    _, D = w.shape
    out_dtype = img.dtype

    pos_b = pos_emb.astype(jnp.float32) + b.astype(jnp.float32)[None, :]
    w_c = w if compute_dtype is None else w.astype(compute_dtype)

    # Patch extraction on the host; the compute-dtype cast is part of the same
    # jitted program so XLA fuses it with the transpose (no standalone cast pass).
    patches = extract_patches(img, ps)
    if compute_dtype is not None:
        patches = patches.astype(compute_dtype)

    tm = _pick_row_tile(N, target_rows)
    grid = (N // tm, B)                 # rows outer, batch inner (pos tile reuse)

    cost = pl.CostEstimate(
        flops=2 * B * N * P * D,
        transcendentals=0,
        bytes_accessed=int(B * N * P * jnp.dtype(patches.dtype).itemsize
                           + P * D * jnp.dtype(w_c.dtype).itemsize
                           + N * D * 4
                           + B * N * D * jnp.dtype(out_dtype).itemsize),
    )

    return pl.pallas_call(
        _matmul_patch_embed_kernel,
        out_shape=jax.ShapeDtypeStruct((B, N, D), out_dtype),
        grid_spec=pltpu.PrefetchScalarGridSpec(
            num_scalar_prefetch=0,
            grid=grid,
            in_specs=[
                pl.BlockSpec((None, tm, P), lambda ri, bi: (bi, ri, 0)),
                pl.BlockSpec((P, D), lambda ri, bi: (0, 0)),
                pl.BlockSpec((tm, D), lambda ri, bi: (ri, 0)),
            ],
            out_specs=pl.BlockSpec((None, tm, D), lambda ri, bi: (bi, ri, 0)),
        ),
        compiler_params=pltpu.CompilerParams(dimension_semantics=("parallel", "parallel")),
        cost_estimate=cost,
    )(patches, w_c, pos_b)


_FUSED_OK = None  # tri-state: None = untested, True/False after first call


def vit_patch_embed(img, w, b, pos_emb, *, patch_size,
                    compute_dtype=jnp.bfloat16, target_rows=512):
    """Patches + PatchEmbedding forward.  Prefers the fused kernel; the first
    call self-tests it against the XLA reference and falls back to the unfused
    path if Mosaic relayout support for the in-kernel patchify is unavailable."""
    global _FUSED_OK
    kw = dict(patch_size=patch_size, compute_dtype=compute_dtype, target_rows=target_rows)
    if _FUSED_OK is not False:
        try:
            out = patch_embedding_fused(img, w, b, pos_emb, **kw)
            if _FUSED_OK is None:
                ref = reference_patch_embed(img, w, b, pos_emb, patch_size, compute_dtype)
                if not bool(jnp.allclose(out, ref, atol=1e-3, rtol=1e-3)):
                    raise ValueError("fused patch-embed self-test failed")
                _FUSED_OK = True
            return out
        except Exception:
            # TODO(synk): fused in-kernel patchify depends on Mosaic relayout
            # (reshape/transpose) support; fall back to host-side patch
            # extraction (one extra HBM pass) when it is unavailable.
            _FUSED_OK = False
    return patch_embedding_unfused(img, w, b, pos_emb, **kw)


# --------------------------------------------------------------------------- demo

if __name__ == "__main__":
    # Small shapes consistent with the module: in_channels=4, img_size=32,
    # patch_size=4 -> num_patch2 = (32//4)^2 = 64, P = 4*4*4 = 64, dim_model = 32.
    B, C, H, W_img = 2, 4, 32, 32
    patch_size, dim_model = 4, 32
    N = (H // patch_size) * (W_img // patch_size)
    P = C * patch_size * patch_size

    key = jax.random.PRNGKey(0)
    k_img, k_w, k_b, k_pos = jax.random.split(key, 4)
    img = jax.random.normal(k_img, (B, C, H, W_img), dtype=jnp.float32)
    # Deterministic parameter init (stands in for nn.Linear / nn.Embedding init).
    w = jax.random.normal(k_w, (P, dim_model), dtype=jnp.float32) * 0.02
    b = jax.random.normal(k_b, (dim_model,), dtype=jnp.float32) * 0.02
    pos_emb = jax.random.normal(k_pos, (N, dim_model), dtype=jnp.float32) * 0.02

    ref = reference_patch_embed(img, w, b, pos_emb, patch_size)  # exact f32 reference

    # Default path: bf16 MXU operands, f32 accumulation (recommended on v5e/v6e/v7x).
    out = jax.block_until_ready(
        vit_patch_embed(img, w, b, pos_emb, patch_size=patch_size))
    assert out.shape == (B, N, dim_model), out.shape
    assert jnp.allclose(out, ref, atol=2e-2, rtol=2e-2), "bf16 path mismatch vs reference"

    # Exact f32 path.
    out_f32 = jax.block_until_ready(
        vit_patch_embed(img, w, b, pos_emb, patch_size=patch_size, compute_dtype=None))
    assert out_f32.shape == (B, N, dim_model), out_f32.shape
    assert jnp.allclose(out_f32, ref, atol=1e-5, rtol=1e-5), "f32 path mismatch vs reference"

    print("KERNEL_OK")
</pallas_src>

<mosaic_0001>
module attributes {stable_mosaic.version = 11 : i64} {
  func.func @_fused_patch_embed_kernel(%arg0: i32, %arg1: i32, %arg2: memref<1x4x32x32xf32, #tpu.memory_space<vmem>>, %arg3: memref<64x32xbf16, #tpu.memory_space<vmem>>, %arg4: memref<64x32xf32, #tpu.memory_space<vmem>>, %arg5: memref<1x64x32xf32, #tpu.memory_space<vmem>>) attributes {dimension_semantics = [#tpu.dimension_semantics<parallel>, #tpu.dimension_semantics<parallel>], iteration_bounds = array<i64: 1, 2>, scalar_prefetch = 0 : i64, scratch_operands = 0 : i64, tpu.core_type = #tpu.core_type<tc>, window_params = [{transform_indices = @transform_0, window_bounds = array<i64: 1, 4, 32, 32>}, {pipeline_mode = #tpu.pipeline_mode<synchronous>, transform_indices = @transform_1, window_bounds = array<i64: 64, 32>}, {transform_indices = @transform_2, window_bounds = array<i64: 64, 32>}, {transform_indices = @transform_3, window_bounds = array<i64: 1, 64, 32>}]} {
    %c0 = arith.constant 0 : index
    %c0_0 = arith.constant 0 : index
    %c0_1 = arith.constant 0 : index
    %c0_2 = arith.constant 0 : index
    %0 = vector.load %arg2[%c0, %c0_0, %c0_1, %c0_2] : memref<1x4x32x32xf32, #tpu.memory_space<vmem>>, vector<1x4x32x32xf32>
    %1 = vector.shape_cast %0 : vector<1x4x32x32xf32> to vector<4x32x32xf32>
    %2 = vector.shape_cast %1 : vector<4x32x32xf32> to vector<4x8x4x8x4xf32>
    %3 = tpu.transpose %2, [1, 3, 0, 2, 4] : vector<4x8x4x8x4xf32> -> vector<8x8x4x4x4xf32>
    %4 = vector.shape_cast %3 : vector<8x8x4x4x4xf32> to vector<64x64xf32>
    %5 = arith.truncf %4 : vector<64x64xf32> to vector<64x64xbf16>
    %c0_3 = arith.constant 0 : index
    %c0_4 = arith.constant 0 : index
    %6 = vector.load %arg3[%c0_3, %c0_4] : memref<64x32xbf16, #tpu.memory_space<vmem>>, vector<64x32xbf16>
    %cst = arith.constant dense<0.000000e+00> : vector<64x32xf32>
    %7 = tpu.matmul %5, %6, %cst {dimension_numbers = #tpu.dot_dimension_numbers<[1], [0], [0], [1], [0, 0, 1, 1], [], []>} : vector<64x64xbf16>, vector<64x32xbf16>, vector<64x32xf32> -> vector<64x32xf32>
    %c0_5 = arith.constant 0 : index
    %c0_6 = arith.constant 0 : index
    %8 = vector.load %arg4[%c0_5, %c0_6] : memref<64x32xf32, #tpu.memory_space<vmem>>, vector<64x32xf32>
    %9 = arith.addf %7, %8 : vector<64x32xf32>
    %c0_7 = arith.constant 0 : index
    %c0_8 = arith.constant 0 : index
    %c0_9 = arith.constant 0 : index
    %10 = vector.load %arg5[%c0_7, %c0_8, %c0_9] : memref<1x64x32xf32, #tpu.memory_space<vmem>>, vector<1x64x32xf32>
    %11 = vector.shape_cast %10 : vector<1x64x32xf32> to vector<64x32xf32>
    %12 = vector.shape_cast %9 : vector<64x32xf32> to vector<1x64x32xf32>
    tpu.vector_store %arg5[%c0_7, %c0_8, %c0_9], %12 {strides = array<i32>} : memref<1x64x32xf32, #tpu.memory_space<vmem>>, vector<1x64x32xf32>,
    return
  }
  func.func @transform_0(%arg0: i32, %arg1: i32) -> (i32, i32, i32, i32) {
    %c0_i32 = arith.constant 0 : i32
    %c0_i32_0 = arith.constant 0 : i32
    %c0_i32_1 = arith.constant 0 : i32
    return %arg1, %c0_i32, %arg0, %c0_i32_0 : i32, i32, i32, i32
  }
  func.func @transform_1(%arg0: i32, %arg1: i32) -> (i32, i32) {
    %c0_i32 = arith.constant 0 : i32
    %c0_i32_0 = arith.constant 0 : i32
    %c0_i32_1 = arith.constant 0 : i32
    return %c0_i32, %c0_i32_0 : i32, i32
  }
  func.func @transform_2(%arg0: i32, %arg1: i32) -> (i32, i32) {
    %c0_i32 = arith.constant 0 : i32
    %c0_i32_0 = arith.constant 0 : i32
    return %arg0, %c0_i32 : i32, i32
  }
  func.func @transform_3(%arg0: i32, %arg1: i32) -> (i32, i32, i32) {
    %c0_i32 = arith.constant 0 : i32
    %c0_i32_0 = arith.constant 0 : i32
    return %arg1, %arg0, %c0_i32 : i32, i32, i32
  }
}

module attributes {stable_mosaic.version = 11 : i64} {
  func.func @_matmul_patch_embed_kernel(%arg0: i32, %arg1: i32, %arg2: memref<1x64x64xbf16, #tpu.memory_space<vmem>>, %arg3: memref<64x32xbf16, #tpu.memory_space<vmem>>, %arg4: memref<64x32xf32, #tpu.memory_space<vmem>>, %arg5: memref<1x64x32xf32, #tpu.memory_space<vmem>>) attributes {dimension_semantics = [#tpu.dimension_semantics<parallel>, #tpu.dimension_semantics<parallel>], iteration_bounds = array<i64: 1, 2>, scalar_prefetch = 0 : i64, scratch_operands = 0 : i64, tpu.core_type = #tpu.core_type<tc>, window_params = [{transform_indices = @transform_0, window_bounds = array<i64: 1, 64, 64>}, {pipeline_mode = #tpu.pipeline_mode<synchronous>, transform_indices = @transform_1, window_bounds = array<i64: 64, 32>}, {transform_indices = @transform_2, window_bounds = array<i64: 64, 32>}, {transform_indices = @transform_3, window_bounds = array<i64: 1, 64, 32>}]} {
    %c0 = arith.constant 0 : index
    %c0_0 = arith.constant 0 : index
    %c0_1 = arith.constant 0 : index
    %0 = vector.load %arg2[%c0, %c0_0, %c0_1] : memref<1x64x64xbf16, #tpu.memory_space<vmem>>, vector<1x64x64xbf16>
    %1 = vector.shape_cast %0 : vector<1x64x64xbf16> to vector<64x64xbf16>
    %c0_2 = arith.constant 0 : index
    %c0_3 = arith.constant 0 : index
    %2 = vector.load %arg3[%c0_2, %c0_3] : memref<64x32xbf16, #tpu.memory_space<vmem>>, vector<64x32xbf16>
    %cst = arith.constant dense<0.000000e+00> : vector<64x32xf32>
    %3 = tpu.matmul %1, %2, %cst {dimension_numbers = #tpu.dot_dimension_numbers<[1], [0], [0], [1], [0, 0, 1, 1], [], []>} : vector<64x64xbf16>, vector<64x32xbf16>, vector<64x32xf32> -> vector<64x32xf32>
    %c0_4 = arith.constant 0 : index
    %c0_5 = arith.constant 0 : index
    %4 = vector.load %arg4[%c0_4, %c0_5] : memref<64x32xf32, #tpu.memory_space<vmem>>, vector<64x32xf32>
    %5 = arith.addf %3, %4 : vector<64x32xf32>
    %c0_6 = arith.constant 0 : index
    %c0_7 = arith.constant 0 : index
    %c0_8 = arith.constant 0 : index
    %6 = vector.load %arg5[%c0_6, %c0_7, %c0_8] : memref<1x64x32xf32, #tpu.memory_space<vmem>>, vector<1x64x32xf32>
    %7 = vector.shape_cast %6 : vector<1x64x32xf32> to vector<64x32xf32>
    %8 = vector.shape_cast %5 : vector<64x32xf32> to vector<1x64x32xf32>
    tpu.vector_store %arg5[%c0_6, %c0_7, %c0_8], %8 {strides = array<i32>} : memref<1x64x32xf32, #tpu.memory_space<vmem>>, vector<1x64x32xf32>,
    return
  }
  func.func @transform_0(%arg0: i32, %arg1: i32) -> (i32, i32, i32) {
    %c0_i32 = arith.constant 0 : i32
    %c0_i32_0 = arith.constant 0 : i32
    return %arg1, %arg0, %c0_i32 : i32, i32, i32
  }
  func.func @transform_1(%arg0: i32, %arg1: i32) -> (i32, i32) {
    %c0_i32 = arith.constant 0 : i32
    %c0_i32_0 = arith.constant 0 : i32
    %c0_i32_1 = arith.constant 0 : i32
    return %c0_i32, %c0_i32_0 : i32, i32
  }
  func.func @transform_2(%arg0: i32, %arg1: i32) -> (i32, i32) {
    %c0_i32 = arith.constant 0 : i32
    %c0_i32_0 = arith.constant 0 : i32
    return %arg0, %c0_i32 : i32, i32
  }
  func.func @transform_3(%arg0: i32, %arg1: i32) -> (i32, i32, i32) {
    %c0_i32 = arith.constant 0 : i32
    %c0_i32_0 = arith.constant 0 : i32
    return %arg1, %arg0, %c0_i32 : i32, i32, i32
  }
}

</mosaic_0001>

<bundles_post_ra>
// kernel: patch_embedding_unfused.1
= control target key start
LH: loop header
LB: loop body
LE: loop exit
PB: predicated region body
PF: predicated region fallthrough
CT: control target
= control target key end

     0   :  { %s592_s12 = smov 0   ;;  %s594_s13 = smov 0   ;;  %s683_s0 = inlined_call_operand.vmem [shape: bf16[2,64,64], index: 0, kind: input, shape index: {}]   ;;  %s684_s1 = inlined_call_operand.vmem [shape: bf16[64,32], index: 1, kind: input, shape index: {}]   ;;  %s685_s2 = inlined_call_operand.vmem [shape: f32[64,32], index: 2, kind: input, shape index: {}]   ;;  %s686_s3 = inlined_call_operand.vmem [shape: f32[2,64,32], index: 3, kind: output, shape index: {}]  }
   0x1   :  { %s596_s14 = smov 0  }
   0x2 LB: > { %s22_s15 = sadd.s32 1, %s566_s13  ;;  %p459_p0 = scmp.ge.s32.totalorder %s570_s14, 1  ;;  %s570_s14 = sphi %s596_s14, %s13_s14   ;;  %s566_s13 = sphi %s594_s13, %s688_s13   ;;  %s562_s12 = sphi %s592_s12, %s687_s12  }
   0x3   : > { %p23_p1 = scmp.ge.s32.totalorder %s22_s15, 2  ;;  %p169_p2 = scmp.lt.s32.totalorder %s570_s14, 3 }
   0x5   : > { %s690_s15 = smov (%p23_p1, %s22_s15), 0  ;;  %p170_p3 = pnand %p459_p0, %p169_p2 }
   0x6   : > { %p207_p4 = scmp.lt.s32.totalorder (!%p170_p3), %s562_s12, 1 }
   0x7   : > { %173 = sbr.rel (%p170_p3) target bundleno = 173 (0xad), region = 32 }
   0xc   : > { %v511_v0 = vld [vmem:[%s684_s1 + $0x18] sm:$0xff]  ;;  %v510_v1 = vld [vmem:[%s684_s1 + $0x10] sm:$0xff]  ;;  %s692_s12 = smov (!%p207_p4, %s562_s12), 1  ;;  %v509_v2 = vld [vmem:[%s684_s1 + $0x8] sm:$0xff]  ;;  %vm301_vm0 = vcmask 523264   ;;  %vm343_vm1 = vcmask 261120  }
   0xd   : > { %318 = vmatpush.bf16.msra.mxu0 %v511_v0  ;;  %512 = vmatpush.bf16.msra.mxu1 %v511_v0  ;;  %s502_s22 = sshll.u32 %s692_s12, 5  ;;  %v508_v3 = vld [vmem:[%s684_s1] sm:$0xff]  ;;  %s503_s28 = sshll.u32 %s692_s12, 6  ;;  %v251_v9 = vld [vmem:[%s685_s2 + $0x10] sm:$0xff]  ;;  %v250_v16 = vld [vmem:[%s685_s2 + $0x8] sm:$0xff] }
   0xe   : > { %513 = vmatpush.bf16.msra.mxu2 %v511_v0  ;;  %514 = vmatpush.bf16.msra.mxu3 %v511_v0  ;;  %s214_s27 = scalar_lea.vmem %s683_s0, %s502_s22  ;;  %v249_v8 = vld [vmem:[%s685_s2] sm:$0xff]  ;;  %s638_s8 = scalar_lea.vmem %s686_s3, %s503_s28  ;;  %v255_v15 = vld [vmem:[%s685_s2 + $0x30] sm:$0xff]  ;;  %v252_v17 = vld [vmem:[%s685_s2 + $0x18] sm:$0xff] }
   0xf   : > { %v504_v4 = vld [vmem:[%s214_s27] sm:$0xff]  ;;  %v505_v5 = vld [vmem:[%s214_s27 + $0x8] sm:$0xff]  ;;  %v506_v6 = vld [vmem:[%s214_s27 + $0x10] sm:$0xff] }
  0x10   : > { %v507_v7 = vld [vmem:[%s214_s27 + $0x18] sm:$0xff]  ;;  %v253_v14 = vld [vmem:[%s685_s2 + $0x20] sm:$0xff]  ;;  %v254_v26 = vld [vmem:[%s685_s2 + $0x28] sm:$0xff] }
  0x11   : > { %319 = vmatpush.bf16.msra.mxu0 %v510_v1  ;;  %515 = vmatpush.bf16.msra.mxu1 %v510_v1  ;;  %v256_v27 = vld [vmem:[%s685_s2 + $0x38] sm:$0xff] }
  0x12   : > { %516 = vmatpush.bf16.msra.mxu2 %v510_v1  ;;  %517 = vmatpush.bf16.msra.mxu3 %v510_v1 }
  0x15   : > { %320 = vmatpush.bf16.msra.mxu0 %v509_v2  ;;  %518 = vmatpush.bf16.msra.mxu1 %v509_v2 }
  0x16   : > { %519 = vmatpush.bf16.msra.mxu2 %v509_v2  ;;  %520 = vmatpush.bf16.msra.mxu3 %v509_v2 }
  0x19   : > { %321 = vmatpush.bf16.msra.mxu0 %v508_v3  ;;  %521 = vmatpush.bf16.msra.mxu1 %v508_v3 }
  0x1a   : > { %522 = vmatpush.bf16.msra.mxu2 %v508_v3  ;;  %523 = vmatpush.bf16.msra.mxu3 %v508_v3 }
  0x1c   : > { %496 = vmatmul.msk.bf16.vlgmr.msra.gmra.mxu0 %vm301_vm0, %v504_v4  ;;  %497 = vmatmul.msk.bf16.vlgmr.msra.gmra.mxu1 %vm301_vm0, %v505_v5 }
  0x1d   : > { %498 = vmatmul.msk.bf16.vlgmr.msra.gmra.mxu2 %vm301_vm0, %v506_v6  ;;  %499 = vmatmul.msk.bf16.vlgmr.msra.gmra.mxu3 %vm301_vm0, %v507_v7 }
  0x99   : > { %v323_v10 = vpop.f32.mrf.mxu0  ;;  %v328_v11 = vpop.f32.mrf.mxu1 }
  0x9a   : > { %v324_v12 = vadd.f32 %v323_v10, %v249_v8  ;;  %v329_v13 = vadd.f32 %v328_v11, %v251_v9 }
  0x9c   : > { %344 = vst.msk [vmem:[%s638_s8] sm:$0xff] %vm343_vm1, %v324_v12 }
  0x9d   : > { %346 = vst.msk [vmem:[%s638_s8 + $0x10] sm:$0xff] %vm343_vm1, %v329_v13 }
  0xa0   : > { %v333_v18 = vpop.f32.mrf.mxu2  ;;  %v338_v19 = vpop.f32.mrf.mxu3 }
  0xa1   : > { %v334_v20 = vadd.f32 %v333_v18, %v253_v14  ;;  %v339_v21 = vadd.f32 %v338_v19, %v255_v15  ;;  %v325_v22 = vpop.f32.mrf.mxu0  ;;  %v330_v23 = vpop.f32.mrf.mxu1 }
  0xa2   : > { %v326_v24 = vadd.f32 %v325_v22, %v250_v16  ;;  %v331_v25 = vadd.f32 %v330_v23, %v252_v17 }
  0xa3   : > { %348 = vst.msk [vmem:[%s638_s8 + $0x20] sm:$0xff] %vm343_vm1, %v334_v20 }
  0xa4   : > { %350 = vst.msk [vmem:[%s638_s8 + $0x30] sm:$0xff] %vm343_vm1, %v339_v21 }
  0xa5   : > { %345 = vst.msk [vmem:[%s638_s8 + $0x8] sm:$0xff] %vm343_vm1, %v326_v24 }
  0xa6   : > { %347 = vst.msk [vmem:[%s638_s8 + $0x18] sm:$0xff] %vm343_vm1, %v331_v25 }
  0xa8   : > { %v335_v28 = vpop.f32.mrf.mxu2  ;;  %v340_v29 = vpop.f32.mrf.mxu3 }
  0xa9   : > { %v336_v30 = vadd.f32 %v335_v28, %v254_v26  ;;  %v341_v31 = vadd.f32 %v340_v29, %v256_v27 }
  0xab   : > { %349 = vst.msk [vmem:[%s638_s8 + $0x28] sm:$0xff] %vm343_vm1, %v336_v30 }
  0xac   : > { %351 = vst.msk [vmem:[%s638_s8 + $0x38] sm:$0xff] %vm343_vm1, %v341_v31 }
  0xad PF: > { %s13_s14 = sadd.s32 1, %s570_s14   ;;  %s687_s12 = smov %s566_s13 }
  0xae   : > { %p10_p5 = scmp.ge.s32.totalorder %s13_s14, 4   ;;  %s688_s13 = smov %s690_s15 }
  0xb0   :  { %12 = sbr.rel (!%p10_p5) target bundleno = 2 (0x2), region = 65 }

</bundles_post_ra>
